<compile_context>
chip_gen: v7x
topology: tpu7x:2x2x1
jax: 0.10.0
libtpu: 0.0.40
codegen_flags: <defaults>
</compile_context>

<pallas_src>
import functools

import jax
import jax.numpy as jnp
from jax import lax
from jax.experimental import pallas as pl
from jax.experimental.pallas import tpu as pltpu

_LANE = 128
_NEG_CLAMP = -100.0  # nn.BCELoss clamps log terms at -100.


def _mask_bce_loss_kernel(conf_ref, tgt_ref, sum_ref, cnt_ref, *,
                          negpos_ratio, p_real):
    # Upcast probabilities only; targets are used purely as a {0,1} mask.
    conf = conf_ref[...].astype(jnp.float32)           # [nb, Pp]
    tgt = tgt_ref[...]                                 # [nb, Pp] bf16 {0,1}
    nb, pp = conf.shape

    pos = tgt > 0
    num_pos = jnp.sum(pos.astype(jnp.int32), axis=1, keepdims=True)   # [nb, 1]
    # clamp(negpos_ratio * num_pos, max=P_real - 1).  Lane-padded columns
    # (col >= p_real) can never be selected because num_neg <= p_real - 1.
    num_neg = jnp.minimum(negpos_ratio * num_pos, p_real - 1)

    col = lax.broadcasted_iota(jnp.int32, (nb, pp), 1)
    m = pos | (col < num_neg)                          # positives ∪ hard negs

    # Single-log BCE: targets are exactly {0,1}, so
    #   -(t*log(p) + (1-t)*log(1-p)) == -log(where(t>0, p, 1-p)).
    # (For t==0 and conf < ~6e-8 this differs from the log1p path by < 1e-7.)
    x = jnp.where(pos, conf, 1.0 - conf)
    bce = -jnp.maximum(jnp.log(x), _NEG_CLAMP)

    bsum = jnp.sum(jnp.where(m, bce, 0.0))
    bcnt = jnp.sum(m.astype(jnp.float32))

    # Lane-dense per-block partials: splat the scalars over an (8,128) tile.
    sum_ref[...] = jnp.broadcast_to(bsum, sum_ref.shape).astype(jnp.float32)
    cnt_ref[...] = jnp.broadcast_to(bcnt, cnt_ref.shape).astype(jnp.float32)


def _choose_block_rows(n, p_pad, pair_bytes, sublane, block_budget_bytes):
    """Largest sublane-multiple row count whose (conf+tgt) block fits budget."""
    per_row = max(1, p_pad * pair_bytes)
    max_rows = max(sublane, block_budget_bytes // per_row)
    nb = max(sublane, (max_rows // sublane) * sublane)
    nb = min(nb, 512)          # beyond ~512 rows the pipeline gains are flat
    if n <= nb:
        return n               # block == full batch dim is always legal
    return nb


def mask_bce_loss(mask_data, mask_targets, *, negpos_ratio=3, conf_dtype=None):
    """Forward pass of Mask_BCELoss.

    mask_data:    [N, C, H, W] probabilities (output of a sigmoid).
    mask_targets: [N, C, H, W] {0,1} ground-truth mask.
    Returns a scalar float32 loss.  (Empty selection returns 0 where PyTorch
    would return NaN.)
    """
    num = mask_data.shape[0]
    conf = mask_data.reshape(num, -1)
    tgt = mask_targets.reshape(num, -1)
    p_real = conf.shape[1]

    # dtype policy: targets are exactly {0,1} -> bf16 is lossless and cuts DMA
    # bytes.  conf stays f32 unless the caller opts into bf16 (or already is).
    if conf_dtype is None:
        conf_dtype = jnp.bfloat16 if conf.dtype == jnp.bfloat16 else jnp.float32
    conf = conf.astype(conf_dtype)
    tgt = tgt.astype(jnp.bfloat16)

    # Lane-pad P to a multiple of 128 so vector loads stay full-width.  Padded
    # columns (conf=0.5, tgt=0) are never selected and contribute nothing.
    p_pad = (-p_real) % _LANE
    if p_pad:
        conf = jnp.pad(conf, ((0, 0), (0, p_pad)), constant_values=0.5)
        tgt = jnp.pad(tgt, ((0, 0), (0, p_pad)))
    pp = p_real + p_pad

    # VMEM-aware block-row selection: keep the (conf+tgt) block pair <= ~8 MiB
    # so that 2 pipeline buffers stay well inside the scoped VMEM budget on
    # every chip (v7x has only 64 MiB physical).  Sublane multiple of 16 keeps
    # bf16 rows vreg-packed (also fine for f32).
    pair_bytes = conf.dtype.itemsize + tgt.dtype.itemsize
    nb = _choose_block_rows(num, pp, pair_bytes, sublane=16,
                            block_budget_bytes=8 << 20)

    # Batch-pad to a multiple of nb with zero-target rows (select nothing,
    # contribute 0 to both partial sums).
    n_pad = (-num) % nb
    if n_pad:
        conf = jnp.pad(conf, ((0, n_pad), (0, 0)), constant_values=0.5)
        tgt = jnp.pad(tgt, ((0, n_pad), (0, 0)))
    nblk = (num + n_pad) // nb

    block_bytes = nb * pp * pair_bytes
    vmem_limit = int(min(64 << 20, max(16 << 20, 4 * block_bytes)))

    kernel = functools.partial(_mask_bce_loss_kernel,
                               negpos_ratio=negpos_ratio, p_real=p_real)
    sums, cnts = pl.pallas_call(
        kernel,
        out_shape=(jax.ShapeDtypeStruct((nblk, 8, _LANE), jnp.float32),
                   jax.ShapeDtypeStruct((nblk, 8, _LANE), jnp.float32)),
        grid_spec=pltpu.PrefetchScalarGridSpec(
            num_scalar_prefetch=0,
            grid=(nblk,),
            in_specs=[
                pl.BlockSpec((nb, pp), lambda i: (i, 0)),
                pl.BlockSpec((nb, pp), lambda i: (i, 0)),
            ],
            out_specs=[
                pl.BlockSpec((1, 8, _LANE), lambda i: (i, 0, 0)),
                pl.BlockSpec((1, 8, _LANE), lambda i: (i, 0, 0)),
            ],
        ),
        compiler_params=pltpu.CompilerParams(
            # Each block writes its own partial tile -> batch axis is
            # embarrassingly parallel (shards across v7x's two TensorCores).
            dimension_semantics=("parallel",),
            vmem_limit_bytes=vmem_limit,
        ),
    )(conf, tgt)

    total = jnp.sum(sums[:, 0, 0])
    count = jnp.sum(cnts[:, 0, 0])
    # PyTorch's mean would be NaN when nothing is selected; return 0 instead.
    return total / jnp.maximum(count, jnp.float32(1.0))


def _ref_mask_bce_loss(mask_data, mask_targets, negpos_ratio=3):
    """Pure-JAX reference with the same (degenerate-rank) semantics.

    Uses the two-log (log / log1p) BCE formulation to cross-check the kernel's
    single-log rewrite.
    """
    num = mask_data.shape[0]
    conf = mask_data.reshape(num, -1).astype(jnp.float32)
    tgt = mask_targets.reshape(num, -1).astype(jnp.float32)
    p = conf.shape[1]
    pos = tgt > 0.0
    num_pos = jnp.sum(pos.astype(jnp.int32), axis=1, keepdims=True)
    num_neg = jnp.minimum(negpos_ratio * num_pos, p - 1)
    col = jnp.arange(p, dtype=jnp.int32)[None, :]
    sel = pos | (col < num_neg)
    log_p = jnp.maximum(jnp.log(conf), -100.0)
    log_1mp = jnp.maximum(jnp.log1p(-conf), -100.0)
    bce = -(tgt * log_p + (1.0 - tgt) * log_1mp)
    total = jnp.sum(jnp.where(sel, bce, 0.0))
    count = jnp.sum(sel.astype(jnp.float32))
    return total / jnp.maximum(count, 1.0)


if __name__ == "__main__":
    key = jax.random.PRNGKey(0)
    k1, k2 = jax.random.split(key)

    # Small shapes consistent with the module: batch=2, channels=4, spatial=16.
    # BCELoss requires inputs in [0, 1], so pass mask_data through a sigmoid.
    shape = (2, 4, 16, 16)
    mask_data = jax.nn.sigmoid(jax.random.normal(k1, shape, jnp.float32))
    mask_targets = (jax.random.uniform(k2, shape) > 0.7).astype(jnp.float32)

    loss = mask_bce_loss(mask_data, mask_targets)
    loss = jax.block_until_ready(loss)
    assert bool(jnp.isfinite(loss)), f"non-finite loss: {loss}"

    ref = _ref_mask_bce_loss(mask_data, mask_targets)
    assert bool(jnp.allclose(loss, ref, rtol=1e-3, atol=1e-3)), (loss, ref)
    print("KERNEL_OK")
</pallas_src>

<mosaic_0001>
module attributes {stable_mosaic.version = 11 : i64} {
  func.func @_mask_bce_loss_kernel(%arg0: i32, %arg1: memref<2x1024xf32, #tpu.memory_space<vmem>>, %arg2: memref<2x1024xbf16, #tpu.memory_space<vmem>>, %arg3: memref<1x8x128xf32, #tpu.memory_space<vmem>>, %arg4: memref<1x8x128xf32, #tpu.memory_space<vmem>>) attributes {dimension_semantics = [#tpu.dimension_semantics<parallel>], iteration_bounds = array<i64: 1>, scalar_prefetch = 0 : i64, scratch_operands = 0 : i64, tpu.core_type = #tpu.core_type<tc>, window_params = [{transform_indices = @transform_0, window_bounds = array<i64: 2, 1024>}, {transform_indices = @transform_1, window_bounds = array<i64: 2, 1024>}, {transform_indices = @transform_2, window_bounds = array<i64: 1, 8, 128>}, {transform_indices = @transform_3, window_bounds = array<i64: 1, 8, 128>}]} {
    %c0 = arith.constant 0 : index
    %c0_0 = arith.constant 0 : index
    %0 = vector.load %arg1[%c0, %c0_0] : memref<2x1024xf32, #tpu.memory_space<vmem>>, vector<2x1024xf32>
    %c0_1 = arith.constant 0 : index
    %c0_2 = arith.constant 0 : index
    %1 = vector.load %arg2[%c0_1, %c0_2] : memref<2x1024xbf16, #tpu.memory_space<vmem>>, vector<2x1024xbf16>
    %cst = arith.constant 0.000000e+00 : bf16
    %2 = vector.broadcast %cst : bf16 to vector<2x1024xbf16>
    %3 = arith.cmpf ogt, %1, %2 : vector<2x1024xbf16>
    %4 = arith.extui %3 : vector<2x1024xi1> to vector<2x1024xi32>
    %cst_3 = arith.constant dense<0> : vector<2xi32>
    %5 = vector.multi_reduction <add>, %4, %cst_3 [1] : vector<2x1024xi32> to vector<2xi32>
    %6 = vector.shape_cast %5 : vector<2xi32> to vector<2x1xi32>
    %c3_i32 = arith.constant 3 : i32
    %7 = vector.broadcast %c3_i32 : i32 to vector<2x1xi32>
    %8 = arith.muli %7, %6 : vector<2x1xi32>
    %c1023_i32 = arith.constant 1023 : i32
    %9 = vector.broadcast %c1023_i32 : i32 to vector<2x1xi32>
    %10 = arith.minsi %8, %9 : vector<2x1xi32>
    %11 = tpu.iota {dimensions = array<i32: 1>} : vector<2x1024xi32>
    %12 = vector.broadcast %10 : vector<2x1xi32> to vector<2x1024xi32>
    %13 = arith.cmpi slt, %11, %12 : vector<2x1024xi32>
    %14 = arith.ori %3, %13 : vector<2x1024xi1>
    %cst_4 = arith.constant 1.000000e+00 : f32
    %15 = vector.broadcast %cst_4 : f32 to vector<2x1024xf32>
    %16 = arith.subf %15, %0 : vector<2x1024xf32>
    %17 = arith.select %3, %0, %16 : vector<2x1024xi1>, vector<2x1024xf32>
    %18 = math.log %17 : vector<2x1024xf32>
    %cst_5 = arith.constant -1.000000e+02 : f32
    %19 = vector.broadcast %cst_5 : f32 to vector<2x1024xf32>
    %20 = arith.maximumf %18, %19 : vector<2x1024xf32>
    %cst_6 = arith.constant 0.000000e+00 : f32
    %21 = vector.broadcast %cst_6 : f32 to vector<2x1024xf32>
    %22 = arith.subf %21, %20 : vector<2x1024xf32>
    %cst_7 = arith.constant 0.000000e+00 : f32
    %23 = vector.broadcast %cst_7 : f32 to vector<2x1024xf32>
    %24 = arith.select %14, %22, %23 : vector<2x1024xi1>, vector<2x1024xf32>
    %25 = vector.shape_cast %24 : vector<2x1024xf32> to vector<1x2x1024xf32>
    %cst_8 = arith.constant dense<0.000000e+00> : vector<1xf32>
    %26 = vector.multi_reduction <add>, %25, %cst_8 [1, 2] : vector<1x2x1024xf32> to vector<1xf32>
    %27 = vector.shape_cast %26 : vector<1xf32> to vector<1x1x1xf32>
    %28 = vector.extract %27[0, 0, 0] : f32 from vector<1x1x1xf32>
    %29 = arith.extui %14 : vector<2x1024xi1> to vector<2x1024xi32>
    %30 = arith.sitofp %29 : vector<2x1024xi32> to vector<2x1024xf32>
    %31 = vector.shape_cast %30 : vector<2x1024xf32> to vector<1x2x1024xf32>
    %cst_9 = arith.constant dense<0.000000e+00> : vector<1xf32>
    %32 = vector.multi_reduction <add>, %31, %cst_9 [1, 2] : vector<1x2x1024xf32> to vector<1xf32>
    %33 = vector.shape_cast %32 : vector<1xf32> to vector<1x1x1xf32>
    %34 = vector.extract %33[0, 0, 0] : f32 from vector<1x1x1xf32>
    %35 = vector.broadcast %28 : f32 to vector<1x8x128xf32>
    %c0_10 = arith.constant 0 : index
    %c0_11 = arith.constant 0 : index
    %c0_12 = arith.constant 0 : index
    %36 = vector.load %arg3[%c0_10, %c0_11, %c0_12] : memref<1x8x128xf32, #tpu.memory_space<vmem>>, vector<1x8x128xf32>
    tpu.vector_store %arg3[%c0_10, %c0_11, %c0_12], %35 {strides = array<i32>} : memref<1x8x128xf32, #tpu.memory_space<vmem>>, vector<1x8x128xf32>,
    %37 = vector.broadcast %34 : f32 to vector<1x8x128xf32>
    %c0_13 = arith.constant 0 : index
    %c0_14 = arith.constant 0 : index
    %c0_15 = arith.constant 0 : index
    %38 = vector.load %arg4[%c0_13, %c0_14, %c0_15] : memref<1x8x128xf32, #tpu.memory_space<vmem>>, vector<1x8x128xf32>
    tpu.vector_store %arg4[%c0_13, %c0_14, %c0_15], %37 {strides = array<i32>} : memref<1x8x128xf32, #tpu.memory_space<vmem>>, vector<1x8x128xf32>,
    return
  }
  func.func @transform_0(%arg0: i32) -> (i32, i32) {
    %c0_i32 = arith.constant 0 : i32
    %c0_i32_0 = arith.constant 0 : i32
    return %arg0, %c0_i32 : i32, i32
  }
  func.func @transform_1(%arg0: i32) -> (i32, i32) {
    %c0_i32 = arith.constant 0 : i32
    %c0_i32_0 = arith.constant 0 : i32
    return %arg0, %c0_i32 : i32, i32
  }
  func.func @transform_2(%arg0: i32) -> (i32, i32, i32) {
    %c0_i32 = arith.constant 0 : i32
    %c0_i32_0 = arith.constant 0 : i32
    %c0_i32_1 = arith.constant 0 : i32
    return %arg0, %c0_i32, %c0_i32_0 : i32, i32, i32
  }
  func.func @transform_3(%arg0: i32) -> (i32, i32, i32) {
    %c0_i32 = arith.constant 0 : i32
    %c0_i32_0 = arith.constant 0 : i32
    %c0_i32_1 = arith.constant 0 : i32
    return %arg0, %c0_i32, %c0_i32_0 : i32, i32, i32
  }
}

</mosaic_0001>

<bundles_post_ra>
// kernel: tpu_custom_call.1
= control target key start
LH: loop header
LB: loop body
LE: loop exit
PB: predicated region body
PF: predicated region fallthrough
CT: control target
= control target key end

     0   :  { %9 = vsyncpa [#allocation3], 0  ;;  %s690_s0 = inlined_call_operand.hbm [shape: f32[2,1024], index: 0, kind: input, shape index: {}]   ;;  %s691_s1 = inlined_call_operand.hbm [shape: bf16[2,1024], index: 1, kind: input, shape index: {}]   ;;  %s692_s2 = inlined_call_operand.hbm [shape: f32[1,8,128], index: 2, kind: output, shape index: {0}]   ;;  %s693_s3 = inlined_call_operand.hbm [shape: f32[1,8,128], index: 3, kind: output, shape index: {1}]  }
   0x1   :  { %10 = vsyncpa [#allocation6], 0 }
   0x2   :  { %11 = vsyncpa [#allocation4], 0 }
   0x3   :  { %12 = vsyncpa [#allocation9], 0  ;;  %s524_s12 = smov [#allocation2]   ;;  %s525_s14 = smov [#allocation5]  }
   0x4   :  { %s19_s13 = sshll.u32 %s524_s12, 4  ;;  %s29_s15 = sshll.u32 %s525_s14, 4  ;;  %s20_s13 = int_to_ptr.vmem [resolvable:$true] %s19_s13  ;;  %s30_s15 = int_to_ptr.vmem [resolvable:$true] %s29_s15 }
   0x5   :  { %s428_s18 = scalar_lea.hbm %s690_s0, 256 }
   0x6   :  { %p429_p0 = scmp.ne.s32.totalorder %s690_s0, %s428_s18  ;;  %p432_p1 = scmp.lt.u32.totalorder %s428_s18, %s690_s0 }
   0x8   :  { %p434_p2 = pnand %p432_p1, %p429_p0 }
   0xa   :  { %437 = shalt.err (!%p434_p2)
}
   0xb   :  { %s438_s23 = scalar_lea.vmem %s20_s13, 256  ;;  %p443_p4 = scmp.lt.s32.totalorder %s20_s13, %s20_s13 }
   0xc   :  { %p439_p3 = scmp.ne.s32.totalorder %s20_s13, %s438_s23  ;;  %p444_p5 = scmp.lt.s32.totalorder %s438_s23, %s438_s23 }
   0xe   :  { %p445_p6 = por %p444_p5, %p443_p4 }
  0x10   :  { %p446_p7 = pnand %p445_p6, %p439_p3 }
  0x12   :  { %449 = shalt.err (!%p446_p7)
}
  0x13   :  { %22 = dma.hbm_to_vmem [thread:$0]  %s690_s0, 256, %s20_s13, [#allocation3]  }
  0x14   :  { %s450_s28 = scalar_lea.hbm %s691_s1, 128 }
  0x15   :  { %p451_p8 = scmp.ne.s32.totalorder %s691_s1, %s450_s28  ;;  %p454_p9 = scmp.lt.u32.totalorder %s450_s28, %s691_s1 }
  0x17   :  { %p456_p10 = pnand %p454_p9, %p451_p8 }
  0x19   :  { %459 = shalt.err (!%p456_p10)
}
  0x1a   :  { %s460_s6 = scalar_lea.vmem %s30_s15, 128  ;;  %p465_p12 = scmp.lt.s32.totalorder %s30_s15, %s30_s15 }
  0x1b   :  { %p461_p11 = scmp.ne.s32.totalorder %s30_s15, %s460_s6  ;;  %p466_p13 = scmp.lt.s32.totalorder %s460_s6, %s460_s6 }
  0x1d   :  { %p467_p0 = por %p466_p13, %p465_p12 }
  0x1f   :  { %p468_p1 = pnand %p467_p0, %p461_p11 }
  0x21   :  { %471 = shalt.err (!%p468_p1)
}
  0x22   :  { %32 = dma.hbm_to_vmem [thread:$0]  %s691_s1, 128, %s30_s15, [#allocation6]  }
  0x23   :  { %516 = dma.done.wait [#allocation3], 256  }
  0x24   :  { %517 = vsyncadd [#allocation3], 4294967040 }
  0x25   :  { %518 = dma.done.wait [#allocation6], 128  }
  0x26   :  { %519 = vsyncadd [#allocation6], 4294967168  ;;  %v526_v0 = vmov 1983009808   ;;  %v57_v2 = vlaneseq  ;;  %v576_v5 = vld [vmem:[#allocation5] sm:$0xff]  ;;  %v527_v6 = vmov 0  }
  0x27   :  { %v55_v1 = vunpack.c.l.s4 %v526_v0  ;;  %vm45_vm0 = vcmp.gt.bf16.partialorder %v576_v5, 0  ;;  %vm103_vm5 = vcmask 1041408   ;;  %v42_v52 = vld [vmem:[#allocation2] sm:$0xff]  ;;  %v43_v53 = vld [vmem:[#allocation2 + $0x8] sm:$0xff]  ;;  %s529_s1 = smov [#allocation7]  }
  0x28   :  { %v58_v4 = vshrl.u32 %v57_v2, 7  ;;  %v46_v7 = vsel %vm45_vm0, 65537, %v527_v6  ;;  %v200_v54 = vsub.f32 1.0, %v42_v52  ;;  %v201_v57 = vsub.f32 1.0, %v43_v53  ;;  %s381_s8 = sshll.u32 %s529_s1, 4  ;;  %s382_s8 = int_to_ptr.vmem [resolvable:$true] %s381_s8 }
  0x29   :  { %v56_v3 = vunpack.c.0.s8 %v55_v1  ;;  %v47_v8 = vunpack.c.l.b16 %v46_v7  ;;  %v48_v9 = vunpack.c.h.b16 %v46_v7  ;;  %v135_v61 = vand.u32 127, %v57_v2  ;;  %s472_s10 = scalar_lea.vmem %s382_s8, 128  ;;  %p477_p3 = scmp.lt.s32.totalorder %s382_s8, %s382_s8 }
  0x2a   :  { %p473_p2 = scmp.ne.s32.totalorder %s382_s8, %s472_s10  ;;  %p478_p4 = scmp.lt.s32.totalorder %s472_s10, %s472_s10 }
  0x2b   :  { %v582_v10 = vsub.s32 %v56_v3, %v58_v4  ;;  %vm584_vm1 = vcmp.ne.s32.totalorder %v47_v8, 0  ;;  %vm588_vm2 = vcmp.ne.s32.totalorder %v48_v9, 0  ;;  %v136_v1 = vadd.s32 128, %v135_v61 }
  0x2c   :  { %v51_v13 = vsel %vm584_vm1, 1, %v527_v6  ;;  %v52_v14 = vsel %vm588_vm2, 1, %v527_v6  ;;  %v202_v58 = vsel %vm584_vm1, %v42_v52, %v200_v54  ;;  %v203_v63 = vsel %vm588_vm2, %v43_v53, %v201_v57  ;;  %p479_p5 = por %p478_p4, %p477_p3 }
  0x2d   :  { %v53_v15 = vcombine.high %v51_v13, %v51_v13  ;;  %v60_v16 = vrot.slane %v51_v13, %v582_v10  ;;  %v70_v17 = vcombine.high %v52_v14, %v52_v14  ;;  %v77_v18 = vrot.slane %v52_v14, %v582_v10 }
  0x2e   :  { %424 = vlog2.f32 %v202_v58  ;;  %v137_v3 = vadd.s32 256, %v135_v61  ;;  %v138_v4 = vadd.s32 384, %v135_v61  ;;  %v139_v8 = vadd.s32 512, %v135_v61  ;;  %p480_p6 = pnand %p479_p5, %p473_p2 }
  0x2f   :  { %v67_v19 = vrot.slane %v53_v15, %v582_v10  ;;  %v68_v20 = vcombine.high %v60_v16, %v60_v16  ;;  %v84_v21 = vrot.slane %v70_v17, %v582_v10  ;;  %v85_v22 = vcombine.high %v77_v18, %v77_v18 }
  0x30   :  { %vm87_vm3 = vcmp.ne.s32.totalorder %v60_v16, 0  ;;  %vm91_vm4 = vcmp.ne.s32.totalorder %v77_v18, 0  ;;  %426 = vlog2.f32 %v203_v63  ;;  %v140_v9 = vadd.s32 640, %v135_v61 }
  0x31   :  { %v69_v23 = vcombine.high %v67_v19, %v67_v19  ;;  %v86_v24 = vcombine.high %v84_v21, %v84_v21  ;;  %vm88_vm6 = vcmp.ne.s32.totalorder %v68_v20, 0  ;;  %vm89_vm7 = vcmp.ne.s32.totalorder %v67_v19, 0 }
  0x32   :  { %vm92_vm8 = vcmp.ne.s32.totalorder %v85_v22, 0  ;;  %vm93_vm9 = vcmp.ne.s32.totalorder %v84_v21, 0  ;;  %v95_v25 = vsel %vm87_vm3, 1, %v527_v6  ;;  %v96_v26 = vsel %vm88_vm6, 1, %v527_v6 }
  0x33   :  { %vm90_vm10 = vcmp.ne.s32.totalorder %v69_v23, 0  ;;  %vm94_vm11 = vcmp.ne.s32.totalorder %v86_v24, 0  ;;  %v97_v27 = vsel %vm89_vm7, 1, %v527_v6  ;;  %v99_v28 = vsel %vm91_vm4, 1, %v527_v6 }
  0x34   :  { %v98_v29 = vsel %vm90_vm10, 1, %v527_v6  ;;  %v100_v30 = vsel %vm92_vm8, 1, %v527_v6  ;;  %v101_v31 = vsel %vm93_vm9, 1, %v527_v6  ;;  %v102_v32 = vsel %vm94_vm11, 1, %v527_v6 }
  0x35   :  { %v104_v33 = vsel %vm103_vm5, %v95_v25, 0  ;;  %v105_v34 = vsel %vm103_vm5, %v96_v26, 0  ;;  %v106_v35 = vsel %vm103_vm5, %v97_v27, 0  ;;  %v107_v36 = vsel %vm103_vm5, %v98_v29, 0 }
  0x36   :  { %v108_v37 = vsel %vm103_vm5, %v99_v28, 0  ;;  %v110_v38 = vsel %vm103_vm5, %v100_v30, 0  ;;  %v112_v39 = vsel %vm103_vm5, %v101_v31, 0  ;;  %v114_v40 = vsel %vm103_vm5, %v102_v32, 0 }
  0x37   :  { %v109_v41 = vadd.s32 %v108_v37, %v104_v33  ;;  %v111_v42 = vadd.s32 %v110_v38, %v105_v34  ;;  %v113_v43 = vadd.s32 %v112_v39, %v106_v35  ;;  %v115_v44 = vadd.s32 %v114_v40, %v107_v36 }
  0x38   :  { %v141_v13 = vadd.s32 768, %v135_v61  ;;  %v142_v11 = vadd.s32 896, %v135_v61  ;;  %v425_v21 = vpop.eup %424 }
  0x39   :  { %v116_v45 = vadd.s32 %v111_v42, %v109_v41  ;;  %v117_v46 = vadd.s32 %v115_v44, %v113_v43  ;;  %v205_v33 = vmul.f32 0.6931472, %v425_v21 }
  0x3a   :  { %v427_v26 = vpop.eup %426 }
  0x3b   :  { %v118_v47 = vadd.s32 %v117_v46, %v116_v45  ;;  %v207_v34 = vmul.f32 0.6931472, %v427_v26  ;;  %v208_v38 = vmax.f32 %v205_v33, -100.0 }
  0x3d   :  { %v120_v48 = vshrl.u32 %v118_v47, 16  ;;  %v119_v49 = vand.u32 65535, %v118_v47  ;;  %v209_v39 = vmax.f32 %v207_v34, -100.0  ;;  %v210_v40 = vsub.f32 0.0, %v208_v38 }
  0x3f   :  { %v122_v50 = vcvt.s32.f32 %v120_v48  ;;  %v121_v51 = vcvt.s32.f32 %v119_v49  ;;  %v211_v41 = vsub.f32 0.0, %v209_v39 }
  0x41   :  { %125 = vadd.xlane.f32.xlu0 %v122_v50 }
  0x45   :  { %123 = vadd.xlane.f32.xlu0 %v121_v51 }
  0xce   :  { %v126_v55 = vpop.xlane.xlu0 %125 }
  0xcf   :  { %v128_v56 = vcvt.f32.s32 %v126_v55 }
  0xd1   :  { %v129_v60 = vshll.u32 %v128_v56, 16 }
  0xd2   :  { %v124_v59 = vpop.xlane.xlu0 %123 }
  0xd3   :  { %v127_v62 = vcvt.f32.s32 %v124_v59 }
  0xd5   :  { %v130_v0 = vadd.s32 %v129_v60, %v127_v62 }
  0xd7   :  { %v131_v7 = vmul.u32 3, %v130_v0 }
  0xd9   :  { %vm132_vm12 = vcmp.lt.s32.totalorder %v131_v7, 1023 }
  0xda   :  { %v133_v14 = vsel %vm132_vm12, %v131_v7, 1023 }
  0xdb   :  { %vm143_vm13 = vcmp.lt.s32.totalorder %v135_v61, %v133_v14  ;;  %vm144_vm14 = vcmp.lt.s32.totalorder %v136_v1, %v133_v14  ;;  %vm145_vm15 = vcmp.lt.s32.totalorder %v137_v3, %v133_v14  ;;  %vm146_vm1 = vcmp.lt.s32.totalorder %v138_v4, %v133_v14 }
  0xdc   :  { %vm147_vm3 = vcmp.lt.s32.totalorder %v139_v8, %v133_v14  ;;  %vm148_vm4 = vcmp.lt.s32.totalorder %v140_v9, %v133_v14  ;;  %vm149_vm2 = vcmp.lt.s32.totalorder %v141_v13, %v133_v14  ;;  %vm150_vm6 = vcmp.lt.s32.totalorder %v142_v11, %v133_v14 }
  0xdd   :  { %v151_v2 = vsel %vm143_vm13, 1, %v527_v6  ;;  %v152_v12 = vsel %vm144_vm14, 1, %v527_v6  ;;  %v153_v15 = vsel %vm145_vm15, 1, %v527_v6  ;;  %v154_v16 = vsel %vm146_vm1, 1, %v527_v6 }
  0xde   :  { %v155_v17 = vsel %vm147_vm3, 1, %v527_v6  ;;  %v156_v18 = vsel %vm148_vm4, 1, %v527_v6  ;;  %v157_v19 = vsel %vm149_vm2, 1, %v527_v6  ;;  %v158_v20 = vsel %vm150_vm6, 1, %v527_v6 }
  0xdf   :  { %v159_v22 = vcombine.low %v151_v2, %v152_v12  ;;  %v160_v23 = vcombine.low %v153_v15, %v154_v16  ;;  %v176_v24 = vcombine.low %v155_v17, %v156_v18  ;;  %v177_v25 = vcombine.low %v157_v19, %v158_v20 }
  0xe0   :  { %v528_v9 = vmov 0.0  }
  0xe1   :  { %v167_v27 = vrot.slane %v159_v22, %v582_v10  ;;  %v174_v28 = vrot.slane %v160_v23, %v582_v10  ;;  %v184_v29 = vrot.slane %v176_v24, %v582_v10  ;;  %v191_v30 = vrot.slane %v177_v25, %v582_v10 }
  0xe3   :  { %v175_v31 = vcombine.low %v167_v27, %v174_v28  ;;  %v192_v32 = vcombine.low %v184_v29, %v191_v30 }
  0xe5   :  { %vm193_vm7 = vcmp.ne.s32.totalorder %v175_v31, 0  ;;  %vm194_vm8 = vcmp.ne.s32.totalorder %v192_v32, 0 }
  0xe6   :  { %v195_v35 = vsel %vm193_vm7, 1, %v527_v6  ;;  %v196_v36 = vsel %vm194_vm8, 1, %v527_v6 }
  0xe7   :  { %v197_v37 = vpack.c.b16 %v196_v36, %v195_v35 }
  0xe9   :  { %vm198_vm9 = vcmp.ne.s16.totalorder %v197_v37, 0 }
  0xea   :  { %vm199_vm10 = vmor %vm45_vm0, %vm198_vm9 }
  0xeb   :  { %v212_v42 = vsel %vm199_vm10, 65537, %v527_v6 }
  0xec   :  { %v213_v43 = vunpack.c.l.b16 %v212_v42  ;;  %v214_v44 = vunpack.c.h.b16 %v212_v42 }
  0xee   :  { %vm215_vm11 = vcmp.ne.s32.totalorder %v213_v43, 0  ;;  %vm216_vm12 = vcmp.ne.s32.totalorder %v214_v44, 0 }
  0xef   :  { %v217_v45 = vsel %vm215_vm11, %v210_v40, 0.0  ;;  %v218_v46 = vsel %vm216_vm12, %v211_v41, 0.0  ;;  %v287_v47 = vsel %vm215_vm11, 1, %v527_v6  ;;  %v288_v55 = vsel %vm216_vm12, 1, %v527_v6 }
  0xf0   :  { %v221_v48 = vcombine.high %v217_v45, %v217_v45  ;;  %v228_v49 = vrot.slane %v217_v45, %v582_v10  ;;  %v289_v50 = vcombine.high %v287_v47, %v287_v47  ;;  %v296_v51 = vrot.slane %v287_v47, %v582_v10 }
  0xf1   :  { %v238_v53 = vcombine.high %v218_v46, %v218_v46  ;;  %v245_v57 = vrot.slane %v218_v46, %v582_v10  ;;  %v306_v63 = vcombine.high %v288_v55, %v288_v55  ;;  %v313_v0 = vrot.slane %v288_v55, %v582_v10 }
  0xf2   :  { %v235_v5 = vrot.slane %v221_v48, %v582_v10  ;;  %v236_v52 = vcombine.high %v228_v49, %v228_v49  ;;  %v304_v54 = vcombine.high %v296_v51, %v296_v51  ;;  %v263_v58 = vsel %vm103_vm5, %v228_v49, 0.0 }
  0xf3   :  { %v303_v61 = vrot.slane %v289_v50, %v582_v10  ;;  %vm323_vm0 = vcmp.ne.s32.totalorder %v296_v51, 0  ;;  %v252_v1 = vrot.slane %v238_v53, %v582_v10  ;;  %v253_v4 = vcombine.high %v245_v57, %v245_v57 }
  0xf4   :  { %v237_v56 = vcombine.high %v235_v5, %v235_v5  ;;  %v264_v59 = vsel %vm103_vm5, %v236_v52, 0.0  ;;  %v266_v62 = vsel %vm103_vm5, %v235_v5, 0.0  ;;  %vm324_vm13 = vcmp.ne.s32.totalorder %v304_v54, 0 }
  0xf5   :  { %v265_v60 = vadd.f32 %v264_v59, %v263_v58  ;;  %v305_v6 = vcombine.high %v303_v61, %v303_v61  ;;  %vm325_vm14 = vcmp.ne.s32.totalorder %v303_v61, 0  ;;  %v405_v13 = vsel %vm323_vm0, 1.0, %v528_v9 }
  0xf6   :  { %v268_v7 = vsel %vm103_vm5, %v237_v56, 0.0  ;;  %v406_v11 = vsel %vm324_vm13, 1.0, %v528_v9  ;;  %v270_v14 = vsel %vm103_vm5, %v245_v57, 0.0  ;;  %v320_v2 = vrot.slane %v306_v63, %v582_v10 }
  0xf7   :  { %v267_v3 = vadd.f32 %v266_v62, %v265_v60  ;;  %v321_v12 = vcombine.high %v313_v0, %v313_v0  ;;  %vm326_vm15 = vcmp.ne.s32.totalorder %v305_v6, 0  ;;  %v254_v15 = vcombine.high %v252_v1, %v252_v1 }
  0xf8   :  { %v407_v17 = vsel %vm325_vm14, 1.0, %v528_v9  ;;  %v272_v18 = vsel %vm103_vm5, %v253_v4, 0.0  ;;  %vm327_vm1 = vcmp.ne.s32.totalorder %v313_v0, 0  ;;  %v347_v19 = vsel %vm103_vm5, %v405_v13, 0.0 }
  0xf9   :  { %v269_v8 = vadd.f32 %v268_v7, %v267_v3  ;;  %v348_v20 = vsel %vm103_vm5, %v406_v11, 0.0  ;;  %v408_v22 = vsel %vm326_vm15, 1.0, %v528_v9  ;;  %v274_v24 = vsel %vm103_vm5, %v252_v1, 0.0 }
  0xfa   :  { %v349_v23 = vadd.f32 %v348_v20, %v347_v19  ;;  %v322_v25 = vcombine.high %v320_v2, %v320_v2  ;;  %vm328_vm3 = vcmp.ne.s32.totalorder %v321_v12, 0  ;;  %v350_v10 = vsel %vm103_vm5, %v407_v17, 0.0 }
  0xfb   :  { %v271_v16 = vadd.f32 %v270_v14, %v269_v8  ;;  %v409_v27 = vsel %vm327_vm1, 1.0, %v528_v9  ;;  %v276_v29 = vsel %vm103_vm5, %v254_v15, 0.0  ;;  %vm329_vm4 = vcmp.ne.s32.totalorder %v320_v2, 0 }
  0xfc   :  { %v351_v28 = vadd.f32 %v350_v10, %v349_v23  ;;  %v352_v30 = vsel %vm103_vm5, %v408_v22, 0.0  ;;  %v410_v32 = vsel %vm328_vm3, 1.0, %v528_v9  ;;  %vm330_vm2 = vcmp.ne.s32.totalorder %v322_v25, 0 }
  0xfd   :  { %v273_v21 = vadd.f32 %v272_v18, %v271_v16  ;;  %v354_v34 = vsel %vm103_vm5, %v409_v27, 0.0  ;;  %v411_v35 = vsel %vm329_vm4, 1.0, %v528_v9  ;;  %v356_v37 = vsel %vm103_vm5, %v410_v32, 0.0 }
  0xfe   :  { %v353_v33 = vadd.f32 %v352_v30, %v351_v28  ;;  %v412_v38 = vsel %vm330_vm2, 1.0, %v528_v9  ;;  %v358_v40 = vsel %vm103_vm5, %v411_v35, 0.0 }
  0xff   :  { %v275_v26 = vadd.f32 %v274_v24, %v273_v21  ;;  %v360_v42 = vsel %vm103_vm5, %v412_v38, 0.0 }
 0x100   :  { %v355_v36 = vadd.f32 %v354_v34, %v353_v33 }
 0x101   :  { %v277_v31 = vadd.f32 %v276_v29, %v275_v26 }
 0x102   :  { %v357_v39 = vadd.f32 %v356_v37, %v355_v36 }
 0x103   :  { %278 = vadd.xlane.f32.xlu1 %v277_v31 }
 0x104   :  { %v359_v41 = vadd.f32 %v358_v40, %v357_v39 }
 0x106   :  { %v361_v43 = vadd.f32 %v360_v42, %v359_v41 }
 0x108   :  { %362 = vadd.xlane.f32.xlu1 %v361_v43 }
 0x190   :  { %v279_v44 = vpop.xlane.xlu1 %278 }
 0x191   :  { %v280_v45 = vrot.slane %v279_v44, 4 }
 0x193   :  { %v281_v46 = vadd.f32 %v280_v45, %v279_v44 }
 0x195   :  { %v282_v47 = vrot.slane %v281_v46, 2  ;;  %v363_v49 = vpop.xlane.xlu1 %362 }
 0x196   :  { %v364_v50 = vrot.slane %v363_v49, 4 }
 0x197   :  { %v283_v48 = vadd.f32 %v282_v47, %v281_v46 }
 0x198   :  { %v365_v5 = vadd.f32 %v364_v50, %v363_v49 }
 0x199   :  { %v284_v51 = vrot.slane %v283_v48, 1 }
 0x19a   :  { %v366_v53 = vrot.slane %v365_v5, 2 }
 0x19b   :  { %v285_v52 = vadd.f32 %v284_v51, %v283_v48 }
 0x19c   :  { %v367_v54 = vadd.f32 %v366_v53, %v365_v5 }
 0x19d   :  { %413 = vpush %v285_v52 }
 0x19e   :  { %v368_v55 = vrot.slane %v367_v54, 1 }
 0x1a0   :  { %v369_v56 = vadd.f32 %v368_v55, %v367_v54 }
 0x1a2   :  { %415 = vpush %v369_v56 }
 0x1ce   :  { %s414_s9 = spop %413 }
 0x1cf   :  { %v371_v57 = vstv %s414_s9 }
 0x1d0   :  { %372 = vst [vmem:[#allocation7] sm:$0xff] %v371_v57 }
 0x1d1   :  { %483 = shalt.err (!%p480_p6)
}
 0x1d2   :  { %s484_s13 = scalar_lea.hbm %s692_s2, 128 }
 0x1d3   :  { %p485_p7 = scmp.ne.s32.totalorder %s692_s2, %s484_s13  ;;  %p488_p8 = scmp.lt.u32.totalorder %s484_s13, %s692_s2 }
 0x1d5   :  { %p490_p9 = pnand %p488_p8, %p485_p7 }
 0x1d7   :  { %493 = shalt.err (!%p490_p9)
}
 0x1d8   :  { %384 = dma.vmem_to_hbm [thread:$0]  %s382_s8, 128, %s692_s2, [#allocation4]  }
 0x1d9   :  { %s530_s20 = smov [#allocation8]   ;;  %s416_s22 = spop %415 }
 0x1da   :  { %s391_s21 = sshll.u32 %s530_s20, 4  ;;  %v373_v58 = vstv %s416_s22  ;;  %s392_s21 = int_to_ptr.vmem [resolvable:$true] %s391_s21 }
 0x1db   :  { %374 = vst [vmem:[#allocation8] sm:$0xff] %v373_v58  ;;  %s494_s23 = scalar_lea.vmem %s392_s21, 128  ;;  %p499_p11 = scmp.lt.s32.totalorder %s392_s21, %s392_s21 }
 0x1dc   :  { %p495_p10 = scmp.ne.s32.totalorder %s392_s21, %s494_s23  ;;  %p500_p12 = scmp.lt.s32.totalorder %s494_s23, %s494_s23 }
 0x1de   :  { %p501_p13 = por %p500_p12, %p499_p11 }
 0x1e0   :  { %p502_p0 = pnand %p501_p13, %p495_p10 }
 0x1e2   :  { %505 = shalt.err (!%p502_p0)
}
 0x1e3   :  { %s506_s26 = scalar_lea.hbm %s693_s3, 128 }
 0x1e4   :  { %p507_p1 = scmp.ne.s32.totalorder %s693_s3, %s506_s26  ;;  %p510_p2 = scmp.lt.u32.totalorder %s506_s26, %s693_s3 }
 0x1e6   :  { %p512_p3 = pnand %p510_p2, %p507_p1 }
 0x1e8   :  { %515 = shalt.err (!%p512_p3)
}
 0x1e9   :  { %394 = dma.vmem_to_hbm [thread:$0]  %s392_s21, 128, %s693_s3, [#allocation9]  }
 0x1ea   :  { %520 = dma.done.wait [#allocation4], 128  }
 0x1eb   :  { %521 = vsyncadd [#allocation4], 4294967168 }
 0x1ec   :  { %522 = dma.done.wait [#allocation9], 128  }
 0x1ed   :  { %523 = vsyncadd [#allocation9], 4294967168 }
 0x1ee   :  { %401 = vsyncpa [#allocation3], 1 }
 0x1ef   :  { %402 = vsyncpa [#allocation6], 1 }
 0x1f0   :  { %403 = vsyncpa [#allocation4], 1 }
 0x1f1   :  { %404 = vsyncpa [#allocation9], 1 }

</bundles_post_ra>
